<compile_context>
chip_gen: v6e
topology: v6e:2x2x1
jax: 0.10.0
libtpu: 0.0.40
codegen_flags: <defaults>
</compile_context>

<pallas_src>
import jax
import jax.numpy as jnp
from jax.experimental import pallas as pl
from jax.experimental.pallas import tpu as pltpu

_ROWS_PER_STEP = 8  # sublane-dense output tile height


def _gather_kernel(idx_ref, table_ref, out_ref):
    # idx_ref:   (B_pad,)  int32 in SMEM (scalar prefetch)
    # table_ref: (V, D)    VMEM, resident across all grid steps (constant index_map)
    # out_ref:   (8, D)    VMEM output tile for this grid step
    base = pl.program_id(0) * _ROWS_PER_STEP
    # Short fixed-trip loop, fully unrolled at trace time: 8 dynamic-sublane
    # reads from the resident table into static sublanes of the output tile.
    for r in range(_ROWS_PER_STEP):
        row_idx = idx_ref[base + r]
        out_ref[pl.ds(r, 1), :] = table_ref[pl.ds(row_idx, 1), :]


@jax.jit
def diffusion_embedding(t, table):
    """Forward pass of DiffusionEmbedding: table[t].

    t:     integer array of shape (B,)
    table: float array of shape (max_steps, embed_dim)
    returns array of shape (B, embed_dim), dtype of `table`.
    """
    b = t.shape[0]
    v, d = table.shape

    # PyTorch's nn.Embedding raises on out-of-range indices; clamp here so the
    # in-kernel dynamic read never goes OOB (VMEM has no runtime bounds check).
    idx = jnp.clip(t.astype(jnp.int32), 0, v - 1)

    # Pad batch to a multiple of the 8-row tile; padded rows gather table[0]
    # and are sliced off below.
    b_pad = ((b + _ROWS_PER_STEP - 1) // _ROWS_PER_STEP) * _ROWS_PER_STEP
    if b_pad != b:
        idx = jnp.pad(idx, (0, b_pad - b))

    # Raise the scoped VMEM limit only when the resident table needs it.
    table_bytes = table.size * table.dtype.itemsize
    tile_bytes = _ROWS_PER_STEP * d * table.dtype.itemsize
    needed = table_bytes + 4 * tile_bytes + (1 << 20)
    cp_kwargs = dict(dimension_semantics=("arbitrary",))
    if needed > (32 << 20):
        cp_kwargs["vmem_limit_bytes"] = needed

    out = pl.pallas_call(
        _gather_kernel,
        out_shape=jax.ShapeDtypeStruct((b_pad, d), table.dtype),
        grid_spec=pltpu.PrefetchScalarGridSpec(
            num_scalar_prefetch=1,                 # idx -> SMEM
            grid=(b_pad // _ROWS_PER_STEP,),       # 8 gathered rows per step
            in_specs=[
                # Full table, constant block index -> DMA'd once, VMEM-resident.
                pl.BlockSpec((v, d), lambda i, idx_ref: (0, 0)),
            ],
            out_specs=pl.BlockSpec(
                (_ROWS_PER_STEP, d), lambda i, idx_ref: (i, 0)
            ),
        ),
        compiler_params=pltpu.CompilerParams(**cp_kwargs),
    )(idx, table)

    return out[:b] if b_pad != b else out


if __name__ == "__main__":
    # Module config (synthetic, deterministic init — nn.Embedding weight shape,
    # values from PRNGKey(0)).
    max_steps = 16
    embed_dim = 128
    batch = 8

    key = jax.random.PRNGKey(0)
    k_w, k_t = jax.random.split(key)
    table = jax.random.normal(k_w, (max_steps, embed_dim), dtype=jnp.float32)
    t = jax.random.randint(k_t, (batch,), 0, max_steps, dtype=jnp.int32)

    out = diffusion_embedding(t, table)
    out = jax.block_until_ready(out)
    ref = jnp.take(table, t, axis=0)
    assert out.shape == (batch, embed_dim)
    assert out.dtype == jnp.float32
    assert jnp.allclose(out, ref), "Pallas embedding mismatch vs reference"

    # Also exercise the non-multiple-of-8 batch (padding) path.
    batch2 = 5
    t2 = jax.random.randint(jax.random.PRNGKey(1), (batch2,), 0, max_steps,
                            dtype=jnp.int32)
    out2 = jax.block_until_ready(diffusion_embedding(t2, table))
    ref2 = jnp.take(table, t2, axis=0)
    assert out2.shape == (batch2, embed_dim)
    assert jnp.allclose(out2, ref2), "Pallas embedding mismatch (padded batch)"

    print("KERNEL_OK")
</pallas_src>

<mosaic_0001>
module attributes {stable_mosaic.version = 11 : i64} {
  func.func @_gather_kernel(%arg0: i32, %arg1: memref<8xi32, #tpu.memory_space<smem>>, %arg2: memref<16x128xf32, #tpu.memory_space<vmem>>, %arg3: memref<8x128xf32, #tpu.memory_space<vmem>>) attributes {dimension_semantics = [#tpu.dimension_semantics<arbitrary>], iteration_bounds = array<i64: 1>, scalar_prefetch = 1 : i64, scratch_operands = 0 : i64, tpu.core_type = #tpu.core_type<tc>, window_params = [{pipeline_mode = #tpu.pipeline_mode<synchronous>, transform_indices = @transform_0, window_bounds = array<i64: 16, 128>}, {transform_indices = @transform_1, window_bounds = array<i64: 8, 128>}]} {
    %c8_i32 = arith.constant 8 : i32
    %0 = arith.muli %arg0, %c8_i32 : i32
    %c0_i32 = arith.constant 0 : i32
    %1 = arith.addi %0, %c0_i32 : i32
    %2 = arith.index_cast %1 : i32 to index
    %3 = memref.load %arg1[%2] : memref<8xi32, #tpu.memory_space<smem>>
    %4 = arith.index_cast %3 : i32 to index
    %c0 = arith.constant 0 : index
    %5 = vector.load %arg2[%4, %c0] : memref<16x128xf32, #tpu.memory_space<vmem>>, vector<1x128xf32>
    %c0_0 = arith.constant 0 : index
    %c0_1 = arith.constant 0 : index
    %6 = vector.load %arg3[%c0_0, %c0_1] : memref<8x128xf32, #tpu.memory_space<vmem>>, vector<1x128xf32>
    tpu.vector_store %arg3[%c0_0, %c0_1], %5 {strides = array<i32>} : memref<8x128xf32, #tpu.memory_space<vmem>>, vector<1x128xf32>,
    %c1_i32 = arith.constant 1 : i32
    %7 = arith.addi %0, %c1_i32 : i32
    %8 = arith.index_cast %7 : i32 to index
    %9 = memref.load %arg1[%8] : memref<8xi32, #tpu.memory_space<smem>>
    %10 = arith.index_cast %9 : i32 to index
    %c0_2 = arith.constant 0 : index
    %11 = vector.load %arg2[%10, %c0_2] : memref<16x128xf32, #tpu.memory_space<vmem>>, vector<1x128xf32>
    %c1 = arith.constant 1 : index
    %c0_3 = arith.constant 0 : index
    %12 = vector.load %arg3[%c1, %c0_3] : memref<8x128xf32, #tpu.memory_space<vmem>>, vector<1x128xf32>
    tpu.vector_store %arg3[%c1, %c0_3], %11 {strides = array<i32>} : memref<8x128xf32, #tpu.memory_space<vmem>>, vector<1x128xf32>,
    %c2_i32 = arith.constant 2 : i32
    %13 = arith.addi %0, %c2_i32 : i32
    %14 = arith.index_cast %13 : i32 to index
    %15 = memref.load %arg1[%14] : memref<8xi32, #tpu.memory_space<smem>>
    %16 = arith.index_cast %15 : i32 to index
    %c0_4 = arith.constant 0 : index
    %17 = vector.load %arg2[%16, %c0_4] : memref<16x128xf32, #tpu.memory_space<vmem>>, vector<1x128xf32>
    %c2 = arith.constant 2 : index
    %c0_5 = arith.constant 0 : index
    %18 = vector.load %arg3[%c2, %c0_5] : memref<8x128xf32, #tpu.memory_space<vmem>>, vector<1x128xf32>
    tpu.vector_store %arg3[%c2, %c0_5], %17 {strides = array<i32>} : memref<8x128xf32, #tpu.memory_space<vmem>>, vector<1x128xf32>,
    %c3_i32 = arith.constant 3 : i32
    %19 = arith.addi %0, %c3_i32 : i32
    %20 = arith.index_cast %19 : i32 to index
    %21 = memref.load %arg1[%20] : memref<8xi32, #tpu.memory_space<smem>>
    %22 = arith.index_cast %21 : i32 to index
    %c0_6 = arith.constant 0 : index
    %23 = vector.load %arg2[%22, %c0_6] : memref<16x128xf32, #tpu.memory_space<vmem>>, vector<1x128xf32>
    %c3 = arith.constant 3 : index
    %c0_7 = arith.constant 0 : index
    %24 = vector.load %arg3[%c3, %c0_7] : memref<8x128xf32, #tpu.memory_space<vmem>>, vector<1x128xf32>
    tpu.vector_store %arg3[%c3, %c0_7], %23 {strides = array<i32>} : memref<8x128xf32, #tpu.memory_space<vmem>>, vector<1x128xf32>,
    %c4_i32 = arith.constant 4 : i32
    %25 = arith.addi %0, %c4_i32 : i32
    %26 = arith.index_cast %25 : i32 to index
    %27 = memref.load %arg1[%26] : memref<8xi32, #tpu.memory_space<smem>>
    %28 = arith.index_cast %27 : i32 to index
    %c0_8 = arith.constant 0 : index
    %29 = vector.load %arg2[%28, %c0_8] : memref<16x128xf32, #tpu.memory_space<vmem>>, vector<1x128xf32>
    %c4 = arith.constant 4 : index
    %c0_9 = arith.constant 0 : index
    %30 = vector.load %arg3[%c4, %c0_9] : memref<8x128xf32, #tpu.memory_space<vmem>>, vector<1x128xf32>
    tpu.vector_store %arg3[%c4, %c0_9], %29 {strides = array<i32>} : memref<8x128xf32, #tpu.memory_space<vmem>>, vector<1x128xf32>,
    %c5_i32 = arith.constant 5 : i32
    %31 = arith.addi %0, %c5_i32 : i32
    %32 = arith.index_cast %31 : i32 to index
    %33 = memref.load %arg1[%32] : memref<8xi32, #tpu.memory_space<smem>>
    %34 = arith.index_cast %33 : i32 to index
    %c0_10 = arith.constant 0 : index
    %35 = vector.load %arg2[%34, %c0_10] : memref<16x128xf32, #tpu.memory_space<vmem>>, vector<1x128xf32>
    %c5 = arith.constant 5 : index
    %c0_11 = arith.constant 0 : index
    %36 = vector.load %arg3[%c5, %c0_11] : memref<8x128xf32, #tpu.memory_space<vmem>>, vector<1x128xf32>
    tpu.vector_store %arg3[%c5, %c0_11], %35 {strides = array<i32>} : memref<8x128xf32, #tpu.memory_space<vmem>>, vector<1x128xf32>,
    %c6_i32 = arith.constant 6 : i32
    %37 = arith.addi %0, %c6_i32 : i32
    %38 = arith.index_cast %37 : i32 to index
    %39 = memref.load %arg1[%38] : memref<8xi32, #tpu.memory_space<smem>>
    %40 = arith.index_cast %39 : i32 to index
    %c0_12 = arith.constant 0 : index
    %41 = vector.load %arg2[%40, %c0_12] : memref<16x128xf32, #tpu.memory_space<vmem>>, vector<1x128xf32>
    %c6 = arith.constant 6 : index
    %c0_13 = arith.constant 0 : index
    %42 = vector.load %arg3[%c6, %c0_13] : memref<8x128xf32, #tpu.memory_space<vmem>>, vector<1x128xf32>
    tpu.vector_store %arg3[%c6, %c0_13], %41 {strides = array<i32>} : memref<8x128xf32, #tpu.memory_space<vmem>>, vector<1x128xf32>,
    %c7_i32 = arith.constant 7 : i32
    %43 = arith.addi %0, %c7_i32 : i32
    %44 = arith.index_cast %43 : i32 to index
    %45 = memref.load %arg1[%44] : memref<8xi32, #tpu.memory_space<smem>>
    %46 = arith.index_cast %45 : i32 to index
    %c0_14 = arith.constant 0 : index
    %47 = vector.load %arg2[%46, %c0_14] : memref<16x128xf32, #tpu.memory_space<vmem>>, vector<1x128xf32>
    %c7 = arith.constant 7 : index
    %c0_15 = arith.constant 0 : index
    %48 = vector.load %arg3[%c7, %c0_15] : memref<8x128xf32, #tpu.memory_space<vmem>>, vector<1x128xf32>
    tpu.vector_store %arg3[%c7, %c0_15], %47 {strides = array<i32>} : memref<8x128xf32, #tpu.memory_space<vmem>>, vector<1x128xf32>,
    return
  }
  func.func @transform_0(%arg0: i32, %arg1: memref<8xi32, #tpu.memory_space<smem>>) -> (i32, i32) {
    %c0_i32 = arith.constant 0 : i32
    %c0_i32_0 = arith.constant 0 : i32
    %c0_i32_1 = arith.constant 0 : i32
    return %c0_i32, %c0_i32_0 : i32, i32
  }
  func.func @transform_1(%arg0: i32, %arg1: memref<8xi32, #tpu.memory_space<smem>>) -> (i32, i32) {
    %c0_i32 = arith.constant 0 : i32
    %c0_i32_0 = arith.constant 0 : i32
    return %arg0, %c0_i32 : i32, i32
  }
}

</mosaic_0001>

<bundles_post_ra>
// kernel: diffusion_embedding.1
= control target key start
LH: loop header
LB: loop body
LE: loop exit
PB: predicated region body
PF: predicated region fallthrough
CT: control target
= control target key end

     0   :  { %s192_s0 = inlined_call_operand.vmem [shape: s32[8], index: 0, kind: input, shape index: {}]   ;;  %s193_s1 = inlined_call_operand.hbm [shape: f32[16,128], index: 1, kind: input, shape index: {}]   ;;  %s194_s2 = inlined_call_operand.hbm [shape: f32[8,128], index: 2, kind: output, shape index: {}]  }
   0x1   :  { %s7_s11 = sshll.u32 %s192_s0, 4  ;;  %s8_s11 = int_to_ptr.vmem [resolvable:$true] %s7_s11 }
   0x2   :  { %s105_s12 = scalar_lea.vmem %s8_s11, 16  ;;  %p110_p1 = scmp.lt.s32.totalorder %s8_s11, %s8_s11 }
   0x3   :  { %p106_p0 = scmp.ne.s32.totalorder %s8_s11, %s105_s12  ;;  %p111_p2 = scmp.lt.s32.totalorder %s105_s12, %s105_s12 }
   0x5   :  { %p112_p3 = por %p111_p2, %p110_p1 }
   0x7   :  { %p113_p4 = pnand %p112_p3, %p106_p0 }
   0x9   :  { %116 = shalt.err (!%p113_p4)  }
   0xa   :  { %s163_s13 = smov [#allocation3]  }
   0xb   :  { %10 = dma.vmem_to_smem %s8_s11, 16, %s163_s13, [#allocation2] }
   0xc   :  { %157 = dma.done.wait [#allocation2], 16 }
   0xd   :  { %158 = vsyncadd [#allocation2], 4294967280 }
   0xe   :  { %12 = sfence }
   0xf   :  { %13 = vsyncpa [#allocation5], 0 }
  0x10   :  { %14 = vsyncpa [#allocation6], 0  ;;  %s164_s14 = smov [#allocation4]  }
  0x11   :  { %s20_s15 = sshll.u32 %s164_s14, 4  ;;  %s21_s15 = int_to_ptr.vmem [resolvable:$true] %s20_s15 }
  0x12   :  { %s125_s16 = scalar_lea.vmem %s21_s15, 256  ;;  %p130_p6 = scmp.lt.s32.totalorder %s21_s15, %s21_s15 }
  0x13   :  { %p126_p5 = scmp.ne.s32.totalorder %s21_s15, %s125_s16  ;;  %p131_p7 = scmp.lt.s32.totalorder %s125_s16, %s125_s16 }
  0x15   :  { %p132_p8 = por %p131_p7, %p130_p6 }
  0x17   :  { %p133_p9 = pnand %p132_p8, %p126_p5 }
  0x19   :  { %136 = shalt.err (!%p133_p9)
}
  0x1a   :  { %s165_s0 = smov 128   ;;  %s166_s17 = smov 8  }
  0x1b   :  { %26 = dma.hbm_to_vmem [thread:$0]  %s193_s1, 256, %s21_s15, [#allocation5], %s165_s0, %s165_s0, %s166_s17  }
  0x1c   :  { %159 = dma.done.wait [#allocation5], 256  }
  0x1d   :  { %160 = vsyncadd [#allocation5], 4294967040  ;;  %s31_s20 = sld [smem:[#allocation3]]  ;;  %s167_s3 = smov [#allocation7]  }
  0x1e   :  { %s93_s21 = sld [smem:[#allocation3 + $0x1]]  ;;  %s76_s4 = sshll.u32 %s167_s3, 4  ;;  %s77_s4 = int_to_ptr.vmem [resolvable:$true] %s76_s4 }
  0x1f   :  { %s94_s22 = sld [smem:[#allocation3 + $0x2]]  ;;  %s137_s9 = scalar_lea.vmem %s77_s4, 128 }
  0x20   :  { %s95_s23 = sld [smem:[#allocation3 + $0x3]]  ;;  %p138_p10 = scmp.ne.s32.totalorder %s77_s4, %s137_s9 }
  0x21   :  { %s96_s24 = sld [smem:[#allocation3 + $0x4]]  ;;  %p142_p11 = scmp.lt.s32.totalorder %s77_s4, %s77_s4 }
  0x22   :  { %s97_s25 = sld [smem:[#allocation3 + $0x5]]  ;;  %p143_p12 = scmp.lt.s32.totalorder %s137_s9, %s137_s9 }
  0x23   :  { %s98_s26 = sld [smem:[#allocation3 + $0x6]]  ;;  %s32_s27 = scalar_lea.vmem [#allocation4], %s31_s20 }
  0x24   :  { %v33_v0 = vld [vmem:[%s32_s27] sm:$0x1]  ;;  %s99_s28 = sld [smem:[#allocation3 + $0x7]]  ;;  %s37_s29 = scalar_lea.vmem [#allocation4], %s93_s21 }
  0x25   :  { %34 = vst [vmem:[#allocation7] sm:$0x1] %v33_v0  ;;  %v38_v1 = vld [vmem:[%s37_s29] sm:$0x1]  ;;  %s42_s30 = scalar_lea.vmem [#allocation4], %s94_s22  ;;  %p144_p13 = por %p143_p12, %p142_p11 }
  0x26   :  { %39 = vst [vmem:[#allocation7 + $0x1] sm:$0x1] %v38_v1  ;;  %v43_v2 = vld [vmem:[%s42_s30] sm:$0x1]  ;;  %s47_s1 = scalar_lea.vmem [#allocation4], %s95_s23 }
  0x27   :  { %44 = vst [vmem:[#allocation7 + $0x2] sm:$0x1] %v43_v2  ;;  %v48_v3 = vld [vmem:[%s47_s1] sm:$0x1]  ;;  %s52_s5 = scalar_lea.vmem [#allocation4], %s96_s24  ;;  %p145_p0 = pnand %p144_p13, %p138_p10 }
  0x28   :  { %49 = vst [vmem:[#allocation7 + $0x3] sm:$0x1] %v48_v3  ;;  %v53_v4 = vld [vmem:[%s52_s5] sm:$0x1]  ;;  %s57_s6 = scalar_lea.vmem [#allocation4], %s97_s25 }
  0x29   :  { %54 = vst [vmem:[#allocation7 + $0x4] sm:$0x1] %v53_v4  ;;  %v58_v5 = vld [vmem:[%s57_s6] sm:$0x1]  ;;  %s62_s7 = scalar_lea.vmem [#allocation4], %s98_s26 }
  0x2a   :  { %59 = vst [vmem:[#allocation7 + $0x5] sm:$0x1] %v58_v5  ;;  %v63_v6 = vld [vmem:[%s62_s7] sm:$0x1]  ;;  %s67_s8 = scalar_lea.vmem [#allocation4], %s99_s28 }
  0x2b   :  { %64 = vst [vmem:[#allocation7 + $0x6] sm:$0x1] %v63_v6  ;;  %v68_v7 = vld [vmem:[%s67_s8] sm:$0x1] }
  0x2c   :  { %69 = vst [vmem:[#allocation7 + $0x7] sm:$0x1] %v68_v7 }
  0x2d   :  { %148 = shalt.err (!%p145_p0)
}
  0x2e   :  { %79 = dma.vmem_to_hbm [thread:$0]  %s77_s4, 128, %s194_s2, [#allocation6]  }
  0x2f   :  { %161 = dma.done.wait [#allocation6], 128  }
  0x30   :  { %162 = vsyncadd [#allocation6], 4294967168 }
  0x31   :  { %83 = vsyncpa [#allocation5], 1 }
  0x32   :  { %84 = vsyncpa [#allocation6], 1 }

</bundles_post_ra>
